<compile_context>
chip_gen: v7x
topology: tpu7x:2x2x1
jax: 0.10.0
libtpu: 0.0.40
codegen_flags: <defaults>
</compile_context>

<pallas_src>
import jax
import jax.numpy as jnp
from jax.experimental import pallas as pl
from jax.experimental.pallas import tpu as pltpu

NWAY_PAD = 128  # lane-dense width for the scores output / padded class axis


# ---------------------------------------------------------------------------
# Fused kernel: CLS select + projection + normalize + prototypes + (-cdist)
# ---------------------------------------------------------------------------
def _fused_proto_kernel(sx_ref, qx_ref, w_ref, b_ref, lab_ref, out_ref):
    # CLS-token rows (== last_hidden_state[:, 0, :]); value-level slice of the
    # whole-array VMEM refs (tiny at few-shot episode sizes).
    xs = sx_ref[...][:, 0, :]                                   # [Ns, F] f32
    xq = qx_ref[...][:, 0, :]                                   # [Nq, F] f32
    w_b = w_ref[...].astype(jnp.bfloat16)                       # [F, D]  bf16 MXU feed
    b = b_ref[...]                                              # [1, D]  f32

    # 1) backbone projection (bf16 MXU operands, f32 accumulation)
    hs = jnp.dot(xs.astype(jnp.bfloat16), w_b,
                 preferred_element_type=jnp.float32) + b        # [Ns, D]
    hq = jnp.dot(xq.astype(jnp.bfloat16), w_b,
                 preferred_element_type=jnp.float32) + b        # [Nq, D]

    # 2) F.normalize(h, p=2, dim=1) in f32; rsqrt runs on the EUP slot
    zs = hs * jax.lax.rsqrt(jnp.maximum(jnp.sum(hs * hs, -1, keepdims=True), 1e-24))
    zq = hq * jax.lax.rsqrt(jnp.maximum(jnp.sum(hq * hq, -1, keepdims=True), 1e-24))

    # 3) prototypes: one-hot built in-kernel from the labels (iota + compare);
    #    class axis padded to NWAY_PAD so the scores store stays lane-dense.
    ns = zs.shape[0]
    classes = jax.lax.broadcasted_iota(jnp.int32, (NWAY_PAD, ns), 0)
    onehot = (lab_ref[...] == classes).astype(jnp.float32)      # [NWP, Ns]
    inv_cnt = 1.0 / jnp.maximum(jnp.sum(onehot, -1, keepdims=True), 1.0)
    proto = jnp.dot(onehot.astype(jnp.bfloat16), zs.astype(jnp.bfloat16),
                    preferred_element_type=jnp.float32) * inv_cnt  # [NWP, D]

    # 4) negative euclidean cdist, lane-dense [Nq, NWAY_PAD] output.
    #    (p2 reshape is a known sublane->lane relayout; the XLU slot is idle.)
    q2 = jnp.sum(zq * zq, -1, keepdims=True)                    # [Nq, 1]
    p2 = jnp.sum(proto * proto, -1).reshape(1, -1)              # [1, NWP]
    qp = jax.lax.dot_general(zq.astype(jnp.bfloat16), proto.astype(jnp.bfloat16),
                             (((1,), (1,)), ((), ())),
                             preferred_element_type=jnp.float32)  # [Nq, NWP]
    d2 = jnp.maximum(q2 + p2 - 2.0 * qp, 0.0)
    out_ref[...] = -jnp.sqrt(d2)


# ---------------------------------------------------------------------------
# Wrapper (jit-able; n_way is static)
# ---------------------------------------------------------------------------
def prototypical_forward(support_x, support_labels, query_x, w, b, *, n_way):
    """support_x/query_x: [N, seq, feat] token features (synthetic backbone input)."""
    nq = query_x.shape[0]
    labels = support_labels.astype(jnp.int32).reshape(1, -1)    # [1, Ns] (view-only glue)

    vmem = lambda: pl.BlockSpec(memory_space=pltpu.MemorySpace.VMEM)
    scores_padded = pl.pallas_call(
        _fused_proto_kernel,
        out_shape=jax.ShapeDtypeStruct((nq, NWAY_PAD), jnp.float32),
        in_specs=[vmem(), vmem(), vmem(), vmem(), vmem()],
        out_specs=vmem(),
    )(support_x, query_x, w, b, labels)

    return scores_padded[:, :n_way]


# Plain-JAX f32 reference (correctness check only)
def _reference(support_x, support_labels, query_x, w, b, n_way):
    sc = support_x[:, 0, :] @ w + b
    qc = query_x[:, 0, :] @ w + b
    zs = sc / jnp.maximum(jnp.linalg.norm(sc, axis=1, keepdims=True), 1e-12)
    zq = qc / jnp.maximum(jnp.linalg.norm(qc, axis=1, keepdims=True), 1e-12)
    mask = (support_labels[:, None] == jnp.arange(n_way)[None, :]).astype(jnp.float32)
    proto = (mask.T @ zs) / jnp.sum(mask, axis=0)[:, None]
    dists = jnp.sqrt(jnp.sum((zq[:, None, :] - proto[None, :, :]) ** 2, axis=-1))
    return -dists


if __name__ == "__main__":
    key = jax.random.PRNGKey(0)
    k1, k2, k3, k4 = jax.random.split(key, 4)

    n_support, n_query, seq, feat, hidden, n_way = 8, 8, 8, 32, 128, 4

    support_x = jax.random.normal(k1, (n_support, seq, feat), dtype=jnp.float32)
    query_x = jax.random.normal(k2, (n_query, seq, feat), dtype=jnp.float32)
    support_labels = jnp.array([0, 1, 2, 3, 0, 1, 2, 3], dtype=jnp.int32)

    # deterministic synthetic backbone params
    w = jax.random.normal(k3, (feat, hidden), dtype=jnp.float32) * 0.05
    b = jax.random.normal(k4, (1, hidden), dtype=jnp.float32) * 0.01

    forward = jax.jit(prototypical_forward, static_argnames=("n_way",))
    scores = forward(support_x, support_labels, query_x, w, b, n_way=n_way)
    jax.block_until_ready(scores)

    # sanity: shape [n_query, n_way], scores are negative distances, matches
    # the f32 reference within bf16-MXU tolerance.
    assert scores.shape == (n_query, n_way)
    assert bool(jnp.all(scores <= 0.0))
    ref = _reference(support_x, support_labels, query_x, w, b, n_way)
    assert bool(jnp.allclose(scores, ref, rtol=2e-2, atol=2e-2))
    print("KERNEL_OK")
</pallas_src>

<mosaic_0001>
module attributes {stable_mosaic.version = 11 : i64} {
  func.func @_fused_proto_kernel(%arg0: memref<8x8x32xf32, #tpu.memory_space<vmem>>, %arg1: memref<8x8x32xf32, #tpu.memory_space<vmem>>, %arg2: memref<32x128xf32, #tpu.memory_space<vmem>>, %arg3: memref<1x128xf32, #tpu.memory_space<vmem>>, %arg4: memref<1x8xi32, #tpu.memory_space<vmem>>, %arg5: memref<8x128xf32, #tpu.memory_space<vmem>>) attributes {dimension_semantics = [], scalar_prefetch = 0 : i64, scratch_operands = 0 : i64, tpu.core_type = #tpu.core_type<tc>} {
    %c0 = arith.constant 0 : index
    %c0_0 = arith.constant 0 : index
    %c0_1 = arith.constant 0 : index
    %0 = vector.load %arg0[%c0, %c0_0, %c0_1] : memref<8x8x32xf32, #tpu.memory_space<vmem>>, vector<8x8x32xf32>
    %1 = vector.extract_strided_slice %0 {offsets = [0, 0, 0], sizes = [8, 1, 32], strides = [1, 1, 1]} : vector<8x8x32xf32> to vector<8x1x32xf32>
    %2 = vector.shape_cast %1 : vector<8x1x32xf32> to vector<8x32xf32>
    %c0_2 = arith.constant 0 : index
    %c0_3 = arith.constant 0 : index
    %c0_4 = arith.constant 0 : index
    %3 = vector.load %arg1[%c0_2, %c0_3, %c0_4] : memref<8x8x32xf32, #tpu.memory_space<vmem>>, vector<8x8x32xf32>
    %4 = vector.extract_strided_slice %3 {offsets = [0, 0, 0], sizes = [8, 1, 32], strides = [1, 1, 1]} : vector<8x8x32xf32> to vector<8x1x32xf32>
    %5 = vector.shape_cast %4 : vector<8x1x32xf32> to vector<8x32xf32>
    %c0_5 = arith.constant 0 : index
    %c0_6 = arith.constant 0 : index
    %6 = vector.load %arg2[%c0_5, %c0_6] : memref<32x128xf32, #tpu.memory_space<vmem>>, vector<32x128xf32>
    %7 = arith.truncf %6 : vector<32x128xf32> to vector<32x128xbf16>
    %c0_7 = arith.constant 0 : index
    %c0_8 = arith.constant 0 : index
    %8 = vector.load %arg3[%c0_7, %c0_8] : memref<1x128xf32, #tpu.memory_space<vmem>>, vector<1x128xf32>
    %9 = arith.truncf %2 : vector<8x32xf32> to vector<8x32xbf16>
    %cst = arith.constant dense<0.000000e+00> : vector<8x128xf32>
    %10 = tpu.matmul %9, %7, %cst {dimension_numbers = #tpu.dot_dimension_numbers<[1], [0], [0], [1], [0, 0, 1, 1], [], []>} : vector<8x32xbf16>, vector<32x128xbf16>, vector<8x128xf32> -> vector<8x128xf32>
    %11 = vector.broadcast %8 : vector<1x128xf32> to vector<8x128xf32>
    %12 = arith.addf %10, %11 : vector<8x128xf32>
    %13 = arith.truncf %5 : vector<8x32xf32> to vector<8x32xbf16>
    %cst_9 = arith.constant dense<0.000000e+00> : vector<8x128xf32>
    %14 = tpu.matmul %13, %7, %cst_9 {dimension_numbers = #tpu.dot_dimension_numbers<[1], [0], [0], [1], [0, 0, 1, 1], [], []>} : vector<8x32xbf16>, vector<32x128xbf16>, vector<8x128xf32> -> vector<8x128xf32>
    %15 = vector.broadcast %8 : vector<1x128xf32> to vector<8x128xf32>
    %16 = arith.addf %14, %15 : vector<8x128xf32>
    %17 = arith.mulf %12, %12 : vector<8x128xf32>
    %cst_10 = arith.constant dense<0.000000e+00> : vector<8xf32>
    %18 = vector.multi_reduction <add>, %17, %cst_10 [1] : vector<8x128xf32> to vector<8xf32>
    %19 = vector.shape_cast %18 : vector<8xf32> to vector<8x1xf32>
    %cst_11 = arith.constant 1.000000e-24 : f32
    %20 = vector.broadcast %cst_11 : f32 to vector<8x1xf32>
    %21 = arith.maximumf %19, %20 : vector<8x1xf32>
    %22 = math.rsqrt %21 : vector<8x1xf32>
    %23 = vector.broadcast %22 : vector<8x1xf32> to vector<8x128xf32>
    %24 = arith.mulf %12, %23 : vector<8x128xf32>
    %25 = arith.mulf %16, %16 : vector<8x128xf32>
    %cst_12 = arith.constant dense<0.000000e+00> : vector<8xf32>
    %26 = vector.multi_reduction <add>, %25, %cst_12 [1] : vector<8x128xf32> to vector<8xf32>
    %27 = vector.shape_cast %26 : vector<8xf32> to vector<8x1xf32>
    %cst_13 = arith.constant 1.000000e-24 : f32
    %28 = vector.broadcast %cst_13 : f32 to vector<8x1xf32>
    %29 = arith.maximumf %27, %28 : vector<8x1xf32>
    %30 = math.rsqrt %29 : vector<8x1xf32>
    %31 = vector.broadcast %30 : vector<8x1xf32> to vector<8x128xf32>
    %32 = arith.mulf %16, %31 : vector<8x128xf32>
    %33 = tpu.iota {dimensions = array<i32: 0>} : vector<128x8xi32>
    %c0_14 = arith.constant 0 : index
    %c0_15 = arith.constant 0 : index
    %34 = vector.load %arg4[%c0_14, %c0_15] : memref<1x8xi32, #tpu.memory_space<vmem>>, vector<1x8xi32>
    %35 = vector.broadcast %34 : vector<1x8xi32> to vector<128x8xi32>
    %36 = arith.cmpi eq, %35, %33 : vector<128x8xi32>
    %37 = arith.extui %36 : vector<128x8xi1> to vector<128x8xi32>
    %38 = arith.sitofp %37 : vector<128x8xi32> to vector<128x8xf32>
    %cst_16 = arith.constant dense<0.000000e+00> : vector<128xf32>
    %39 = vector.multi_reduction <add>, %38, %cst_16 [1] : vector<128x8xf32> to vector<128xf32>
    %40 = vector.shape_cast %39 : vector<128xf32> to vector<128x1xf32>
    %cst_17 = arith.constant 1.000000e+00 : f32
    %41 = vector.broadcast %cst_17 : f32 to vector<128x1xf32>
    %42 = arith.maximumf %40, %41 : vector<128x1xf32>
    %cst_18 = arith.constant 1.000000e+00 : f32
    %43 = vector.broadcast %cst_18 : f32 to vector<128x1xf32>
    %44 = arith.divf %43, %42 : vector<128x1xf32>
    %45 = arith.truncf %38 : vector<128x8xf32> to vector<128x8xbf16>
    %46 = arith.truncf %24 : vector<8x128xf32> to vector<8x128xbf16>
    %cst_19 = arith.constant dense<0.000000e+00> : vector<128x128xf32>
    %47 = tpu.matmul %45, %46, %cst_19 {dimension_numbers = #tpu.dot_dimension_numbers<[1], [0], [0], [1], [0, 0, 1, 1], [], []>} : vector<128x8xbf16>, vector<8x128xbf16>, vector<128x128xf32> -> vector<128x128xf32>
    %48 = vector.broadcast %44 : vector<128x1xf32> to vector<128x128xf32>
    %49 = arith.mulf %47, %48 : vector<128x128xf32>
    %50 = arith.mulf %32, %32 : vector<8x128xf32>
    %cst_20 = arith.constant dense<0.000000e+00> : vector<8xf32>
    %51 = vector.multi_reduction <add>, %50, %cst_20 [1] : vector<8x128xf32> to vector<8xf32>
    %52 = vector.shape_cast %51 : vector<8xf32> to vector<8x1xf32>
    %53 = arith.mulf %49, %49 : vector<128x128xf32>
    %cst_21 = arith.constant dense<0.000000e+00> : vector<128xf32>
    %54 = vector.multi_reduction <add>, %53, %cst_21 [1] : vector<128x128xf32> to vector<128xf32>
    %55 = vector.shape_cast %54 : vector<128xf32> to vector<1x128xf32>
    %56 = arith.truncf %32 : vector<8x128xf32> to vector<8x128xbf16>
    %57 = arith.truncf %49 : vector<128x128xf32> to vector<128x128xbf16>
    %cst_22 = arith.constant dense<0.000000e+00> : vector<8x128xf32>
    %58 = tpu.matmul %56, %57, %cst_22 {dimension_numbers = #tpu.dot_dimension_numbers<[1], [1], [0], [0], [0, 0, 1, 0], [], []>} : vector<8x128xbf16>, vector<128x128xbf16>, vector<8x128xf32> -> vector<8x128xf32>
    %59 = vector.broadcast %52 : vector<8x1xf32> to vector<8x128xf32>
    %60 = vector.broadcast %55 : vector<1x128xf32> to vector<8x128xf32>
    %61 = arith.addf %59, %60 : vector<8x128xf32>
    %cst_23 = arith.constant 2.000000e+00 : f32
    %62 = vector.broadcast %cst_23 : f32 to vector<8x128xf32>
    %63 = arith.mulf %62, %58 : vector<8x128xf32>
    %64 = arith.subf %61, %63 : vector<8x128xf32>
    %cst_24 = arith.constant 0.000000e+00 : f32
    %65 = vector.broadcast %cst_24 : f32 to vector<8x128xf32>
    %66 = arith.maximumf %64, %65 : vector<8x128xf32>
    %67 = math.sqrt %66 : vector<8x128xf32>
    %cst_25 = arith.constant 0.000000e+00 : f32
    %68 = vector.broadcast %cst_25 : f32 to vector<8x128xf32>
    %69 = arith.subf %68, %67 : vector<8x128xf32>
    %c0_26 = arith.constant 0 : index
    %c0_27 = arith.constant 0 : index
    %70 = vector.load %arg5[%c0_26, %c0_27] : memref<8x128xf32, #tpu.memory_space<vmem>>, vector<8x128xf32>
    tpu.vector_store %arg5[%c0_26, %c0_27], %69 {strides = array<i32>} : memref<8x128xf32, #tpu.memory_space<vmem>>, vector<8x128xf32>,
    return
  }
}

</mosaic_0001>

<bundles_post_ra>
// kernel: prototypical_forward.1
= control target key start
LH: loop header
LB: loop body
LE: loop exit
PB: predicated region body
PF: predicated region fallthrough
CT: control target
= control target key end

     0   :  { %10 = vsyncpa [#allocation3], 0  ;;  %s1362_s0 = inlined_call_operand.hbm [shape: f32[8,8,32], index: 0, kind: input, shape index: {}]   ;;  %s1363_s1 = inlined_call_operand.hbm [shape: f32[8,8,32], index: 1, kind: input, shape index: {}]   ;;  %s1364_s2 = inlined_call_operand.hbm [shape: f32[32,128], index: 2, kind: input, shape index: {}]   ;;  %s1365_s3 = inlined_call_operand.vmem [shape: f32[1,128], index: 3, kind: input, shape index: {}]   ;;  %s1366_s4 = inlined_call_operand.vmem [shape: s32[1,8], index: 4, kind: input, shape index: {}]   ;;  %s1367_s5 = inlined_call_operand.vmem [shape: f32[8,128], index: 5, kind: output, shape index: {}]  }
   0x1   :  { %11 = vsyncpa [#allocation5], 0  ;;  %s1067_s18 = smov [#allocation4]   ;;  %s1068_s20 = smov [#allocation2]  }
   0x2   :  { %s29_s19 = sshll.u32 %s1067_s18, 4  ;;  %s17_s21 = sshll.u32 %s1068_s20, 4  ;;  %s30_s19 = int_to_ptr.vmem [resolvable:$true] %s29_s19  ;;  %s1104_s21 = int_to_ptr.vmem [resolvable:$true] %s17_s21 }
   0x3   :  { %s997_s24 = scalar_lea.hbm %s1363_s1, 1024 }
   0x4   :  { %p998_p0 = scmp.ne.s32.totalorder %s1363_s1, %s997_s24  ;;  %p1001_p1 = scmp.lt.u32.totalorder %s997_s24, %s1363_s1 }
   0x6   :  { %p1003_p2 = pnand %p1001_p1, %p998_p0 }
   0x8   :  { %1006 = shalt.err (!%p1003_p2)
}
   0x9   :  { %s1007_s29 = scalar_lea.vmem %s30_s19, 1024  ;;  %p1012_p4 = scmp.lt.s32.totalorder %s30_s19, %s30_s19 }
   0xa   :  { %p1008_p3 = scmp.ne.s32.totalorder %s30_s19, %s1007_s29  ;;  %p1013_p5 = scmp.lt.s32.totalorder %s1007_s29, %s1007_s29 }
   0xc   :  { %p1014_p6 = por %p1013_p5, %p1012_p4 }
   0xe   :  { %p1015_p7 = pnand %p1014_p6, %p1008_p3 }
  0x10   :  { %1018 = shalt.err (!%p1015_p7)
}
  0x11   :  { %s1069_s30 = smov 128   ;;  %s1070_s6 = smov 8  }
  0x12   :  { %35 = dma.hbm_to_vmem [thread:$0]  %s1363_s1, 1024, %s30_s19, [#allocation5], %s1069_s30, %s1069_s30, %s1070_s6  }
  0x13   :  { %s1019_s11 = scalar_lea.hbm %s1362_s0, 1024 }
  0x14   :  { %p1020_p8 = scmp.ne.s32.totalorder %s1362_s0, %s1019_s11  ;;  %p1023_p9 = scmp.lt.u32.totalorder %s1019_s11, %s1362_s0 }
  0x16   :  { %p1025_p10 = pnand %p1023_p9, %p1020_p8 }
  0x18   :  { %1028 = shalt.err (!%p1025_p10)
}
  0x19   :  { %s1029_s16 = scalar_lea.vmem %s1104_s21, 1024  ;;  %p1034_p12 = scmp.lt.s32.totalorder %s1104_s21, %s1104_s21 }
  0x1a   :  { %p1030_p11 = scmp.ne.s32.totalorder %s1104_s21, %s1029_s16  ;;  %p1035_p13 = scmp.lt.s32.totalorder %s1029_s16, %s1029_s16 }
  0x1c   :  { %p1036_p0 = por %p1035_p13, %p1034_p12 }
  0x1e   :  { %p1037_p1 = pnand %p1036_p0, %p1030_p11 }
  0x20   :  { %1040 = shalt.err (!%p1037_p1)
}
  0x21   :  { %23 = dma.hbm_to_vmem [thread:$0]  %s1362_s0, 1024, %s1104_s21, [#allocation3], %s1069_s30, %s1069_s30, %s1070_s6  }
  0x22   :  { %s1071_s18 = smov [#allocation6]   ;;  %s1041_s23 = scalar_lea.hbm %s1364_s2, 512 }
  0x23   :  { %s41_s19 = sshll.u32 %s1071_s18, 4  ;;  %p1042_p2 = scmp.ne.s32.totalorder %s1364_s2, %s1041_s23  ;;  %s42_s19 = int_to_ptr.vmem [resolvable:$true] %s41_s19 }
  0x24   :  { %p1045_p3 = scmp.lt.u32.totalorder %s1041_s23, %s1364_s2 }
  0x26   :  { %p1047_p4 = pnand %p1045_p3, %p1042_p2 }
  0x28   :  { %1050 = shalt.err (!%p1047_p4)
}
  0x29   :  { %s1051_s28 = scalar_lea.vmem %s42_s19, 512  ;;  %p1056_p6 = scmp.lt.s32.totalorder %s42_s19, %s42_s19 }
  0x2a   :  { %p1052_p5 = scmp.ne.s32.totalorder %s42_s19, %s1051_s28  ;;  %p1057_p7 = scmp.lt.s32.totalorder %s1051_s28, %s1051_s28 }
  0x2c   :  { %p1058_p8 = por %p1057_p7, %p1056_p6 }
  0x2e   :  { %p1059_p9 = pnand %p1058_p8, %p1052_p5 }
  0x30   :  { %1062 = shalt.err (!%p1059_p9)
}
  0x31   :  { %47 = dma.hbm_to_vmem [thread:$0]  %s1364_s2, 512, %s42_s19, [#allocation5], %s1069_s30, %s1069_s30, %s1070_s6  }
  0x32   :  { %1063 = dma.done.wait [#allocation3], 1024  }
  0x33   :  { %1064 = vsyncadd [#allocation3], 4294966272 }
  0x34   :  { %1065 = dma.done.wait [#allocation5], 1536  }
  0x35   :  { %1066 = vsyncadd [#allocation5], 4294965760  ;;  %v1072_v0 = vmov 0.0   ;;  %vm1073_vm0 = vmmov 0   ;;  %v78_v1 = vld [vmem:[#allocation6] sm:$0xff]  ;;  %v79_v2 = vld [vmem:[#allocation6 + $0x8] sm:$0xff] }
  0x36   :  { %897 = vmatprep.subr.bf16.mxu0 %v1072_v0  ;;  %901 = vmatprep.mubr.msk.bf16.mxu0 %vm1073_vm0, %v1072_v0  ;;  %v80_v3 = vld [vmem:[#allocation6 + $0x10] sm:$0xff]  ;;  %v1162_v4 = vpack.c.bf16 %v79_v2, %v78_v1  ;;  %v81_v5 = vld [vmem:[#allocation6 + $0x18] sm:$0xff]  ;;  %v62_v6 = vld [vmem:[#allocation2] sm:$0xff]  ;;  %vm116_vm1 = vcmask 1041409   ;;  %vm119_vm2 = vcmask 1042434   ;;  %vm122_vm3 = vcmask 1043459  }
  0x37   :  { %931 = vmatprep.subr.bf16.mxu1 %v1072_v0  ;;  %947 = vmatprep.mubr.msk.bf16.mxu1 %vm1073_vm0, %v1072_v0  ;;  %v63_v7 = vld [vmem:[#allocation2 + $0x8] sm:$0xff]  ;;  %v64_v8 = vld [vmem:[#allocation2 + $0x10] sm:$0xff]  ;;  %v65_v9 = vld [vmem:[#allocation2 + $0x18] sm:$0xff]  ;;  %v85_v11 = vpack.c.bf16 %v62_v6, %v62_v6  ;;  %vm125_vm4 = vcmask 1044484   ;;  %vm128_vm5 = vcmask 1045509   ;;  %v1165_v13 = vpack.c.bf16 %v81_v5, %v80_v3 }
  0x38   :  { %v66_v10 = vld [vmem:[#allocation2 + $0x20] sm:$0xff]  ;;  %v86_v12 = vpack.c.bf16 %v63_v7, %v63_v7  ;;  %898 = vmatpush3.bf16.msra.mxu0 %v1162_v4  ;;  %v67_v14 = vld [vmem:[#allocation2 + $0x28] sm:$0xff]  ;;  %v68_v15 = vld [vmem:[#allocation2 + $0x30] sm:$0xff]  ;;  %v87_v17 = vpack.c.bf16 %v64_v8, %v64_v8  ;;  %v88_v18 = vpack.c.bf16 %v65_v9, %v65_v9  ;;  %vm131_vm6 = vcmask 1046534  }
  0x39   :  { %v69_v16 = vld [vmem:[#allocation2 + $0x38] sm:$0xff]  ;;  %v89_v19 = vpack.c.bf16 %v66_v10, %v66_v10  ;;  %899 = vmatprep.subr.bf16.mxu0 %v1072_v0  ;;  %v90_v20 = vpack.c.bf16 %v67_v14, %v67_v14  ;;  %v91_v21 = vpack.c.bf16 %v68_v15, %v68_v15  ;;  %v107_v23 = vunpack.c.l.b16 %v85_v11  ;;  %v70_v24 = vld [vmem:[#allocation4] sm:$0xff]  ;;  %v71_v29 = vld [vmem:[#allocation4 + $0x8] sm:$0xff] }
  0x3a   :  { %v92_v22 = vpack.c.bf16 %v69_v16, %v69_v16  ;;  %vm134_vm7 = vcmask 1047559   ;;  %v108_v25 = vunpack.c.l.b16 %v86_v12  ;;  %v109_v26 = vunpack.c.l.b16 %v87_v17  ;;  %v72_v30 = vld [vmem:[#allocation4 + $0x10] sm:$0xff]  ;;  %v73_v34 = vld [vmem:[#allocation4 + $0x18] sm:$0xff]  ;;  %v74_v35 = vld [vmem:[#allocation4 + $0x20] sm:$0xff] }
  0x3b   :  { %v110_v27 = vunpack.c.l.b16 %v88_v18  ;;  %v111_v28 = vunpack.c.l.b16 %v89_v19  ;;  %v112_v31 = vunpack.c.l.b16 %v90_v20  ;;  %v113_v32 = vunpack.c.l.b16 %v91_v21  ;;  %v75_v36 = vld [vmem:[#allocation4 + $0x28] sm:$0xff]  ;;  %v76_v42 = vld [vmem:[#allocation4 + $0x30] sm:$0xff]  ;;  %v77_v43 = vld [vmem:[#allocation4 + $0x38] sm:$0xff] }
  0x3c   :  { %v114_v33 = vunpack.c.l.b16 %v92_v22  ;;  %v181_v37 = vpack.c.bf16 %v70_v24, %v70_v24  ;;  %900 = vmatpush3.bf16.msra.mxu0 %v1165_v13  ;;  %v115_v38 = vrot.slane %v108_v25, 7  ;;  %v118_v39 = vrot.slane %v109_v26, 6 }
  0x3d   :  { %v121_v40 = vrot.slane %v110_v27, 5  ;;  %v124_v41 = vrot.slane %v111_v28, 4  ;;  %v127_v44 = vrot.slane %v112_v31, 3  ;;  %v130_v45 = vrot.slane %v113_v32, 2  ;;  %905 = vmatprep.subr.bf16.mxu0 %v1072_v0 }
  0x3e   :  { %v133_v46 = vrot.slane %v114_v33, 1  ;;  %v182_v47 = vpack.c.bf16 %v71_v29, %v71_v29  ;;  %v117_v48 = vsel %vm116_vm1, %v115_v38, %v107_v23  ;;  %v183_v49 = vpack.c.bf16 %v72_v30, %v72_v30 }
  0x3f   :  { %v184_v50 = vpack.c.bf16 %v73_v34, %v73_v34  ;;  %v185_v51 = vpack.c.bf16 %v74_v35, %v74_v35  ;;  %v120_v52 = vsel %vm119_vm2, %v118_v39, %v117_v48  ;;  %v186_v53 = vpack.c.bf16 %v75_v36, %v75_v36 }
  0x40   :  { %v187_v54 = vpack.c.bf16 %v76_v42, %v76_v42  ;;  %v188_v55 = vpack.c.bf16 %v77_v43, %v77_v43  ;;  %v123_v56 = vsel %vm122_vm3, %v121_v40, %v120_v52  ;;  %v197_v57 = vunpack.c.l.b16 %v181_v37 }
  0x41   :  { %v198_v58 = vunpack.c.l.b16 %v182_v47  ;;  %v199_v59 = vunpack.c.l.b16 %v183_v49  ;;  %v126_v60 = vsel %vm125_vm4, %v124_v41, %v123_v56  ;;  %v200_v61 = vunpack.c.l.b16 %v184_v50 }
  0x42   :  { %v201_v62 = vunpack.c.l.b16 %v185_v51  ;;  %v202_v63 = vunpack.c.l.b16 %v186_v53  ;;  %v129_v1 = vsel %vm128_vm5, %v127_v44, %v126_v60  ;;  %v203_v2 = vunpack.c.l.b16 %v187_v54  ;;  %v845_v51 = vld [vmem:[%s1365_s3] ss:$0 sm:$0xff] }
  0x43   :  { %v204_v3 = vunpack.c.l.b16 %v188_v55  ;;  %v205_v5 = vrot.slane %v198_v58, 7  ;;  %v132_v6 = vsel %vm131_vm6, %v130_v45, %v129_v1  ;;  %v207_v7 = vrot.slane %v199_v59, 6 }
  0x44   :  { %v209_v8 = vrot.slane %v200_v61, 5  ;;  %v211_v9 = vrot.slane %v201_v62, 4  ;;  %v135_v10 = vsel %vm134_vm7, %v133_v46, %v132_v6  ;;  %vm137_vm8 = vcmask 261120  }
  0x45   :  { %v206_v11 = vsel %vm116_vm1, %v205_v5, %v197_v57  ;;  %v213_v12 = vrot.slane %v202_v63, 3  ;;  %v136_v14 = vpack.c.b16 %v135_v10, %v135_v10  ;;  %v215_v16 = vrot.slane %v203_v2, 2 }
  0x46   :  { %v208_v15 = vsel %vm119_vm2, %v207_v7, %v206_v11  ;;  %v217_v18 = vrot.slane %v204_v3, 1  ;;  %v275_v24 = vlaneseq  ;;  %vm345_vm10 = vcmask 64512  }
  0x47   :  { %v210_v17 = vsel %vm122_vm3, %v209_v8, %v208_v15  ;;  %902 = vmatmul.mubr.msk.bf16.vlgmr.msra.gmra.mrb[0].mxu0 %vm137_vm8, %v136_v14 }
  0x48   :  { %v212_v19 = vsel %vm125_vm4, %v211_v9, %v210_v17  ;;  %906 = vmatpush3.bf16.msra.mxu0 %v1162_v4  ;;  %909 = vmatprep.mubr.msk.bf16.mxu0 %vm1073_vm0, %v1072_v0  ;;  %v1192_v25 = vshrl.u32 %v275_v24, 7  ;;  %v1197_v4 = vld [vmem:[%s1366_s4] ss:$0 sm:$0xff] }
  0x49   :  { %v214_v20 = vsel %vm128_vm5, %v213_v12, %v212_v19  ;;  %907 = vmatprep.subr.bf16.mxu0 %v1072_v0 }
  0x4a   :  { %v216_v21 = vsel %vm131_vm6, %v215_v16, %v214_v20  ;;  %v277_v26 = vadd.s32 8, %v1192_v25  ;;  %vm297_vm9 = vcmp.eq.s32.totalorder %v1197_v4, %v1192_v25  ;;  %v278_v27 = vadd.s32 16, %v1192_v25 }
  0x4b   :  { %v218_v22 = vsel %vm134_vm7, %v217_v18, %v216_v21  ;;  %v280_v28 = vadd.s32 32, %v1192_v25  ;;  %v282_v33 = vadd.s32 48, %v1192_v25  ;;  %v284_v36 = vadd.s32 64, %v1192_v25 }
  0x4c   :  { %v219_v23 = vpack.c.b16 %v218_v22, %v218_v22  ;;  %908 = vmatpush3.bf16.msra.mxu0 %v1165_v13  ;;  %v849_v13 = vsel %vm297_vm9, 1.0, %v1072_v0  ;;  %vm298_vm11 = vcmp.eq.s32.totalorder %v1197_v4, %v277_v26  ;;  %vm299_vm12 = vcmp.eq.s32.totalorder %v1197_v4, %v278_v27 }
  0x4d   :  { %v850_v29 = vsel %vm298_vm11, 1.0, %v1072_v0  ;;  %v1209_v30 = vsel %vm299_vm12, 1.0, %v1072_v0  ;;  %vm301_vm13 = vcmp.eq.s32.totalorder %v1197_v4, %v280_v28  ;;  %vm303_vm14 = vcmp.eq.s32.totalorder %v1197_v4, %v282_v33 }
  0x4e   :  { %v349_v31 = vsel %vm345_vm10, %v850_v29, 0.0  ;;  %v442_v32 = vpack.c.bf16 %v850_v29, %v849_v13  ;;  %v352_v34 = vsel %vm345_vm10, %v1209_v30, 0.0  ;;  %v1218_v35 = vsel %vm301_vm13, 1.0, %v1072_v0 }
  0x4f   :  { %910 = vmatmul.mubr.msk.bf16.vlgmr.msra.gmra.mrb[4].mxu0 %vm137_vm8, %v219_v23  ;;  %350 = vadd.xlane.f32.xlu1 %v349_v31  ;;  %v358_v37 = vsel %vm345_vm10, %v1218_v35, 0.0  ;;  %v1225_v38 = vsel %vm303_vm14, 1.0, %v1072_v0  ;;  %vm305_vm15 = vcmp.eq.s32.totalorder %v1197_v4, %v284_v36  ;;  %v286_v39 = vadd.s32 80, %v1192_v25 }
  0x50   :  { %915 = vmatprep.mubr.msk.bf16.mxu0 %vm345_vm10, %v442_v32  ;;  %v364_v40 = vsel %vm345_vm10, %v1225_v38, 0.0  ;;  %v1232_v41 = vsel %vm305_vm15, 1.0, %v1072_v0  ;;  %v288_v42 = vadd.s32 96, %v1192_v25  ;;  %v290_v45 = vadd.s32 112, %v1192_v25 }
  0x51   :  { %vm307_vm0 = vcmp.eq.s32.totalorder %v1197_v4, %v286_v39  ;;  %v370_v43 = vsel %vm345_vm10, %v1232_v41, 0.0  ;;  %v279_v1 = vadd.s32 24, %v1192_v25  ;;  %v281_v2 = vadd.s32 40, %v1192_v25 }
  0x52   :  { %v1239_v44 = vsel %vm307_vm0, 1.0, %v1072_v0  ;;  %vm309_vm1 = vcmp.eq.s32.totalorder %v1197_v4, %v288_v42  ;;  %vm311_vm2 = vcmp.eq.s32.totalorder %v1197_v4, %v290_v45  ;;  %v346_v3 = vsel %vm345_vm10, %v849_v13, 0.0 }
  0x53   :  { %353 = vadd.xlane.f32.xlu1 %v352_v34  ;;  %v376_v46 = vsel %vm345_vm10, %v1239_v44, 0.0  ;;  %v1246_v47 = vsel %vm309_vm1, 1.0, %v1072_v0  ;;  %v1252_v49 = vsel %vm311_vm2, 1.0, %v1072_v0  ;;  %vm300_vm3 = vcmp.eq.s32.totalorder %v1197_v4, %v279_v1 }
  0x54   :  { %v382_v48 = vsel %vm345_vm10, %v1246_v47, 0.0  ;;  %v388_v50 = vsel %vm345_vm10, %v1252_v49, 0.0  ;;  %v852_v5 = vsel %vm300_vm3, 1.0, %v1072_v0  ;;  %vm302_vm4 = vcmp.eq.s32.totalorder %v1197_v4, %v281_v2 }
  0x55   :  { %v283_v6 = vadd.s32 56, %v1192_v25  ;;  %v355_v7 = vsel %vm345_vm10, %v852_v5, 0.0  ;;  %v854_v8 = vsel %vm302_vm4, 1.0, %v1072_v0  ;;  %v285_v9 = vadd.s32 72, %v1192_v25 }
  0x56   :  { %v361_v10 = vsel %vm345_vm10, %v854_v8, 0.0  ;;  %v287_v12 = vadd.s32 88, %v1192_v25  ;;  %v289_v16 = vadd.s32 104, %v1192_v25  ;;  %v291_v19 = vadd.s32 120, %v1192_v25 }
  0x57   :  { %359 = vadd.xlane.f32.xlu1 %v358_v37  ;;  %vm304_vm5 = vcmp.eq.s32.totalorder %v1197_v4, %v283_v6  ;;  %vm306_vm6 = vcmp.eq.s32.totalorder %v1197_v4, %v285_v9  ;;  %vm475_vm11 = vcmask 1043456   ;;  %v443_v32 = vpack.c.bf16 %v852_v5, %v1209_v30 }
  0x58   :  { %v856_v11 = vsel %vm304_vm5, 1.0, %v1072_v0  ;;  %v858_v15 = vsel %vm306_vm6, 1.0, %v1072_v0  ;;  %vm308_vm7 = vcmp.eq.s32.totalorder %v1197_v4, %v287_v12  ;;  %vm310_vm8 = vcmp.eq.s32.totalorder %v1197_v4, %v289_v16 }
  0x59   :  { %v367_v14 = vsel %vm345_vm10, %v856_v11, 0.0  ;;  %v373_v17 = vsel %vm345_vm10, %v858_v15, 0.0  ;;  %v860_v18 = vsel %vm308_vm7, 1.0, %v1072_v0  ;;  %v862_v21 = vsel %vm310_vm8, 1.0, %v1072_v0 }
  0x5a   :  { %v379_v20 = vsel %vm345_vm10, %v860_v18, 0.0  ;;  %vm312_vm9 = vcmp.eq.s32.totalorder %v1197_v4, %v291_v19  ;;  %v385_v22 = vsel %vm345_vm10, %v862_v21, 0.0  ;;  %v444_v4 = vpack.c.bf16 %v854_v8, %v1218_v35 }
  0x5b   :  { %365 = vadd.xlane.f32.xlu1 %v364_v40  ;;  %v864_v23 = vsel %vm312_vm9, 1.0, %v1072_v0  ;;  %v445_v34 = vpack.c.bf16 %v856_v11, %v1225_v38  ;;  %v446_v36 = vpack.c.bf16 %v858_v15, %v1232_v41  ;;  %v447_v37 = vpack.c.bf16 %v860_v18, %v1239_v44 }
  0x5c   :  { %v391_v26 = vsel %vm345_vm10, %v864_v23, 0.0  ;;  %v448_v30 = vpack.c.bf16 %v862_v21, %v1246_v47  ;;  %v449_v35 = vpack.c.bf16 %v864_v23, %v1252_v49  ;;  %vm726_vm12 = vcmask 195712  }
  0x5d   :  { %vm733_vm13 = vcmask 261312   ;;  %vm740_vm14 = vcmask 326912   ;;  %vm747_vm15 = vcmask 392512   ;;  %vm754_vm0 = vcmask 458112  }
  0x5e   :  { %vm761_vm1 = vcmask 523712   ;;  %vm768_vm2 = vcmask 589312   ;;  %vm775_vm3 = vcmask 654912   ;;  %vm782_vm4 = vcmask 720512  }
  0x5f   :  { %371 = vadd.xlane.f32.xlu1 %v370_v43  ;;  %vm789_vm5 = vcmask 786112   ;;  %vm796_vm6 = vcmask 851712   ;;  %vm803_vm7 = vcmask 917312   ;;  %vm810_vm8 = vcmask 982912  }
  0x60   :  { %vm817_vm9 = vcmask 1048512  }
  0x63   :  { %377 = vadd.xlane.f32.xlu1 %v376_v46 }
  0x67   :  { %383 = vadd.xlane.f32.xlu1 %v382_v48 }
  0x6b   :  { %389 = vadd.xlane.f32.xlu1 %v388_v50 }
  0xdc   :  { %v351_v39 = vpop.xlane.xlu1 %350 }
  0xdd   :  { %v395_v47 = vmax.f32 %v351_v39, 1.0 }
  0xe0   :  { %v354_v40 = vpop.xlane.xlu1 %353 }
  0xe1   :  { %v396_v46 = vmax.f32 %v354_v40, 1.0 }
  0xe4   :  { %v360_v42 = vpop.xlane.xlu1 %359 }
  0xe8   :  { %v366_v45 = vpop.xlane.xlu1 %365 }
 0x11a   :  { %v175_v52 = vpop.f32.mrb[0].mxu0 }
 0x11b   :  { %v176_v53 = vadd.f32 %v845_v51, %v175_v52  ;;  %v903_v54 = vpop.f32.mrb[1].mxu0  ;;  %v400_v52 = vmax.f32 %v366_v45, 1.0 }
 0x11c   :  { %v178_v55 = vpop.f32.mrb[2].mxu0 }
 0x11d   :  { %v904_v56 = vpop.f32.mrb[3].mxu0  ;;  %v263_v57 = vmul.f32 %v176_v53, %v176_v53 }
 0x11f   :  { %264 = vadd.xlane.f32.xlu0 %v263_v57 }
 0x122   :  { %v257_v58 = vpop.f32.mrb[4].mxu0 }
 0x123   :  { %v1259_v59 = vadd.f32 %v845_v51, %v257_v58  ;;  %v911_v60 = vpop.f32.mrb[5].mxu0  ;;  %347 = vadd.xlane.f32.xlu0 %v346_v3  ;;  %v372_v51 = vpop.xlane.xlu1 %371 }
 0x124   :  { %v260_v61 = vpop.f32.mrb[6].mxu0  ;;  %v402_v3 = vmax.f32 %v372_v51, 1.0 }
 0x125   :  { %v269_v62 = vmul.f32 %v1259_v59, %v1259_v59  ;;  %v912_v63 = vpop.f32.mrb[7].mxu0 }
 0x127   :  { %270 = vadd.xlane.f32.xlu1 %v269_v62  ;;  %356 = vadd.xlane.f32.xlu0 %v355_v7  ;;  %v378_v54 = vpop.xlane.xlu1 %377 }
 0x128   :  { %v404_v62 = vmax.f32 %v378_v54, 1.0 }
 0x12b   :  { %362 = vadd.xlane.f32.xlu0 %v361_v10  ;;  %v384_v63 = vpop.xlane.xlu1 %383 }
 0x12f   :  { %368 = vadd.xlane.f32.xlu0 %v367_v14 }
 0x133   :  { %374 = vadd.xlane.f32.xlu0 %v373_v17 }
 0x137   :  { %380 = vadd.xlane.f32.xlu0 %v379_v20  ;;  %v390_v20 = vpop.xlane.xlu1 %389 }
 0x13b   :  { %386 = vadd.xlane.f32.xlu0 %v385_v22 }
 0x13f   :  { %392 = vadd.xlane.f32.xlu0 %v391_v26 }
 0x1ac   :  { %v265_v27 = vpop.xlane.xlu0 %264 }
 0x1ad   :  { %v266_v13 = vmax.f32 %v265_v27, 1e-24 }
 0x1af   :  { %959 = vrsqrt.f32 %v266_v13  ;;  %v406_v13 = vmax.f32 %v384_v63, 1.0 }
 0x1b0   :  { %v348_v38 = vpop.xlane.xlu0 %347  ;;  %961 = vrcp.f32 %v396_v46 }
 0x1b1   :  { %v394_v48 = vmax.f32 %v348_v38, 1.0 }
 0x1b3   :  { %963 = vrcp.f32 %v394_v48 }
 0x1b4   :  { %v357_v41 = vpop.xlane.xlu0 %356  ;;  %v271_v40 = vpop.xlane.xlu1 %270 }
 0x1b5   :  { %v397_v50 = vmax.f32 %v357_v41, 1.0 }
 0x1b7   :  { %965 = vrcp.f32 %v397_v50  ;;  %v272_v50 = vmax.f32 %v271_v40, 1e-24 }
 0x1b8   :  { %v363_v43 = vpop.xlane.xlu0 %362  ;;  %967 = vrcp.f32 %v395_v47 }
 0x1b9   :  { %v960_v28 = vpop.eup %959  ;;  %v399_v56 = vmax.f32 %v363_v43, 1.0  ;;  %969 = vrcp.f32 %v400_v52 }
 0x1ba   :  { %v268_v29 = vmul.f32 %v960_v28, %v176_v53  ;;  %v398_v53 = vmax.f32 %v360_v42, 1.0  ;;  %v962_v58 = vpop.eup %961 }
 0x1bc   :  { %v450_v31 = vpack.c.bf16 %v268_v29, %v268_v29  ;;  %v369_v44 = vpop.xlane.xlu0 %368  ;;  %971 = vrcp.f32 %v398_v53 }
 0x1bd   :  { %v401_v55 = vmax.f32 %v369_v44, 1.0  ;;  %v964_v60 = vpop.eup %963 }
 0x1be   :  { %951 = vmatprep.subr.msk.bf16.mxu0 %vm475_vm11, %v450_v31  ;;  %v477_v33 = vsel %vm475_vm11, %v450_v31, 0  ;;  %v408_v31 = vmax.f32 %v390_v20, 1.0 }
 0x1bf   :  { %914 = vmatpush3.bf16.msra.mxu0 %v477_v33  ;;  %973 = vrcp.f32 %v401_v55 }
 0x1c0   :  { %v375_v49 = vpop.xlane.xlu0 %374  ;;  %975 = vrcp.f32 %v399_v56 }
 0x1c1   :  { %v966_v61 = vpop.eup %965  ;;  %v403_v10 = vmax.f32 %v375_v49, 1.0  ;;  %977 = vrcp.f32 %v404_v62 }
 0x1c2   :  { %916 = vmatmul.mubr.msk.bf16.vlgmr.msra.gmra.mrb[8].mxu0 %vm345_vm10, %v443_v32  ;;  %v968_v2 = vpop.eup %967  ;;  %979 = vrcp.f32 %v402_v3 }
 0x1c3   :  { %919 = vmatprep.mubr.msk.bf16.mxu0 %vm345_vm10, %v444_v4  ;;  %v970_v19 = vpop.eup %969 }
 0x1c4   :  { %v381_v57 = vpop.xlane.xlu0 %380 }
 0x1c5   :  { %v405_v9 = vmax.f32 %v381_v57, 1.0 }
 0x1c6   :  { %v972_v22 = vpop.eup %971 }
 0x1c7   :  { %981 = vrcp.f32 %v405_v9 }
 0x1c8   :  { %v387_v7 = vpop.xlane.xlu0 %386  ;;  %983 = vrcp.f32 %v403_v10 }
 0x1c9   :  { %v974_v27 = vpop.eup %973  ;;  %v407_v39 = vmax.f32 %v387_v7, 1.0  ;;  %985 = vrcp.f32 %v406_v13 }
 0x1ca   :  { %920 = vmatmul.mubr.msk.bf16.gmra.mrb[12].mxu0 %vm345_vm10, %v445_v34  ;;  %v976_v29 = vpop.eup %975  ;;  %987 = vrcp.f32 %v408_v31  ;;  %v1325_v31 = vand.u32 127, %v275_v24 }
 0x1cb   :  { %923 = vmatprep.mubr.msk.bf16.mxu0 %vm345_vm10, %v446_v36  ;;  %v978_v46 = vpop.eup %977 }
 0x1cc   :  { %v393_v26 = vpop.xlane.xlu0 %392  ;;  %v980_v44 = vpop.eup %979 }
 0x1d1   :  { %v982_v51 = vpop.eup %981 }
 0x1d2   :  { %924 = vmatmul.mubr.msk.bf16.gmra.mrb[16].mxu0 %vm345_vm10, %v447_v37  ;;  %v409_v37 = vmax.f32 %v393_v26, 1.0  ;;  %v984_v52 = vpop.eup %983 }
 0x1d3   :  { %927 = vmatprep.mubr.msk.bf16.mxu0 %vm345_vm10, %v448_v30 }
 0x1d4   :  { %989 = vrcp.f32 %v409_v37  ;;  %v721_v37 = vadd.s32 4294967280, %v1325_v31 }
 0x1d5   :  { %991 = vrcp.f32 %v407_v39  ;;  %v728_v39 = vadd.s32 4294967272, %v1325_v31 }
 0x1d6   :  { %993 = vrsqrt.f32 %v272_v50  ;;  %v724_v24 = vsub.s32 %v721_v37, %v1192_v25 }
 0x1da   :  { %928 = vmatmul.mubr.msk.bf16.gmra.mrb[20].mxu0 %vm345_vm10, %v449_v35  ;;  %vm719_vm10 = vcmask 130112  }
 0x295   :  { %v917_v1 = vpop.f32.mrb[8].mxu0 }
 0x296   :  { %v578_v5 = vmul.f32 %v962_v58, %v917_v1  ;;  %v513_v6 = vpop.f32.mrb[9].mxu0 }
 0x297   :  { %v918_v8 = vpop.f32.mrb[10].mxu0  ;;  %v576_v11 = vmul.f32 %v964_v60, %v513_v6 }
 0x298   :  { %v579_v12 = vmul.f32 %v966_v61, %v918_v8  ;;  %v516_v14 = vpop.f32.mrb[11].mxu0  ;;  %v597_v15 = vmul.f32 %v578_v5, %v578_v5 }
 0x299   :  { %v577_v16 = vmul.f32 %v968_v2, %v516_v14  ;;  %v595_v23 = vmul.f32 %v576_v11, %v576_v11  ;;  %v986_v2 = vpop.eup %985 }
 0x29a   :  { %v645_v17 = vpack.c.bf16 %v579_v12, %v578_v5  ;;  %615 = vadd.xlane.f32.xlu0 %v597_v15  ;;  %v598_v18 = vmul.f32 %v579_v12, %v579_v12  ;;  %v988_v5 = vpop.eup %987 }
 0x29b   :  { %v644_v21 = vpack.c.bf16 %v577_v16, %v576_v11  ;;  %v596_v4 = vmul.f32 %v577_v16, %v577_v16  ;;  %v990_v7 = vpop.eup %989 }
 0x29c   :  { %617 = vadd.xlane.f32.xlu1 %v598_v18  ;;  %v992_v9 = vpop.eup %991 }
 0x29d   :  { %v921_v28 = vpop.f32.mrb[12].mxu0  ;;  %932 = vmatpush3.bf16.xpose.msra.mxu1 %v644_v21 }
 0x29e   :  { %v1306_v32 = vmul.f32 %v970_v19, %v921_v28  ;;  %611 = vadd.xlane.f32.xlu0 %v595_v23  ;;  %v529_v33 = vpop.f32.mrb[13].mxu0  ;;  %933 = vmatprep.subr.bf16.mxu1 %v1072_v0  ;;  %v994_v19 = vpop.eup %993 }
 0x29f   :  { %v580_v34 = vmul.f32 %v972_v22, %v529_v33  ;;  %v922_v36 = vpop.f32.mrb[14].mxu0  ;;  %v714_v33 = vadd.s32 4294967288, %v1325_v31 }
 0x2a0   :  { %v1309_v30 = vmul.f32 %v974_v27, %v922_v36  ;;  %613 = vadd.xlane.f32.xlu1 %v596_v4  ;;  %v601_v35 = vmul.f32 %v1306_v32, %v1306_v32  ;;  %v532_v38 = vpop.f32.mrb[15].mxu0  ;;  %v274_v27 = vmul.f32 %v994_v19, %v1259_v59 }
 0x2a1   :  { %v581_v41 = vmul.f32 %v976_v29, %v532_v38  ;;  %v599_v45 = vmul.f32 %v580_v34, %v580_v34 }
 0x2a2   :  { %v647_v42 = vpack.c.bf16 %v1309_v30, %v1306_v32  ;;  %623 = vadd.xlane.f32.xlu0 %v601_v35  ;;  %v602_v43 = vmul.f32 %v1309_v30, %v1309_v30  ;;  %v592_v13 = vmul.f32 %v274_v27, %v274_v27  ;;  %v643_v28 = vpack.c.bf16 %v274_v27, %v274_v27 }
 0x2a3   :  { %v646_v48 = vpack.c.bf16 %v581_v41, %v580_v34  ;;  %v600_v47 = vmul.f32 %v581_v41, %v581_v41  ;;  %v717_v34 = vsub.s32 %v714_v33, %v1192_v25  ;;  %v735_v35 = vadd.s32 4294967264, %v1325_v31 }
 0x2a4   :  { %625 = vadd.xlane.f32.xlu1 %v602_v43 }
 0x2a5   :  { %v925_v49 = vpop.f32.mrb[16].mxu0  ;;  %934 = vmatpush3.bf16.xpose.msra.mxu1 %v645_v17  ;;  %v738_v43 = vsub.s32 %v735_v35, %v1192_v25 }
 0x2a6   :  { %v586_v53 = vmul.f32 %v978_v46, %v925_v49  ;;  %619 = vadd.xlane.f32.xlu0 %v599_v45  ;;  %v545_v54 = vpop.f32.mrb[17].mxu0  ;;  %935 = vmatprep.subr.bf16.mxu1 %v1072_v0  ;;  %v731_v45 = vsub.s32 %v728_v39, %v1192_v25 }
 0x2a7   :  { %v584_v55 = vmul.f32 %v980_v44, %v545_v54  ;;  %v926_v56 = vpop.f32.mrb[18].mxu0  ;;  %v749_v44 = vadd.s32 4294967248, %v1325_v31 }
 0x2a8   :  { %v587_v57 = vmul.f32 %v982_v51, %v926_v56  ;;  %621 = vadd.xlane.f32.xlu1 %v600_v47  ;;  %v605_v58 = vmul.f32 %v586_v53, %v586_v53  ;;  %v548_v60 = vpop.f32.mrb[19].mxu0  ;;  %v763_v56 = vadd.s32 4294967232, %v1325_v31 }
 0x2a9   :  { %v585_v61 = vmul.f32 %v984_v52, %v548_v60  ;;  %v603_v1 = vmul.f32 %v584_v55, %v584_v55 }
 0x2aa   :  { %v649_v62 = vpack.c.bf16 %v587_v57, %v586_v53  ;;  %631 = vadd.xlane.f32.xlu0 %v605_v58  ;;  %v606_v63 = vmul.f32 %v587_v57, %v587_v57  ;;  %v756_v53 = vadd.s32 4294967240, %v1325_v31 }
 0x2ab   :  { %v648_v3 = vpack.c.bf16 %v585_v61, %v584_v55  ;;  %v604_v6 = vmul.f32 %v585_v61, %v585_v61  ;;  %v752_v55 = vsub.s32 %v749_v44, %v1192_v25 }
 0x2ac   :  { %633 = vadd.xlane.f32.xlu1 %v606_v63  ;;  %v770_v63 = vadd.s32 4294967224, %v1325_v31 }
 0x2ad   :  { %v929_v8 = vpop.f32.mrb[20].mxu0  ;;  %936 = vmatpush3.bf16.xpose.msra.mxu1 %v646_v48 }
 0x2ae   :  { %627 = vadd.xlane.f32.xlu0 %v603_v1  ;;  %v561_v10 = vpop.f32.mrb[21].mxu0  ;;  %937 = vmatprep.subr.bf16.mxu1 %v1072_v0  ;;  %v590_v11 = vmul.f32 %v988_v5, %v929_v8  ;;  %v773_v8 = vsub.s32 %v770_v63, %v1192_v25 }
 0x2af   :  { %v588_v12 = vmul.f32 %v986_v2, %v561_v10  ;;  %v930_v14 = vpop.f32.mrb[22].mxu0  ;;  %v766_v2 = vsub.s32 %v763_v56, %v1192_v25 }
 0x2b0   :  { %v591_v15 = vmul.f32 %v990_v7, %v930_v14  ;;  %629 = vadd.xlane.f32.xlu1 %v604_v6  ;;  %v564_v16 = vpop.f32.mrb[23].mxu0  ;;  %v609_v23 = vmul.f32 %v590_v11, %v590_v11  ;;  %v777_v6 = vadd.s32 4294967216, %v1325_v31 }
 0x2b1   :  { %v589_v17 = vmul.f32 %v992_v9, %v564_v16  ;;  %v607_v18 = vmul.f32 %v588_v12, %v588_v12 }
 0x2b2   :  { %v651_v20 = vpack.c.bf16 %v591_v15, %v590_v11  ;;  %v610_v26 = vmul.f32 %v591_v15, %v591_v15  ;;  %v780_v14 = vsub.s32 %v777_v6, %v1192_v25 }
 0x2b3   :  { %v650_v21 = vpack.c.bf16 %v589_v17, %v588_v12  ;;  %635 = vadd.xlane.f32.xlu0 %v607_v18  ;;  %v608_v22 = vmul.f32 %v589_v17, %v589_v17  ;;  %v784_v12 = vadd.s32 4294967208, %v1325_v31  ;;  %v791_v18 = vadd.s32 4294967200, %v1325_v31 }
 0x2b5   :  { %938 = vmatpush3.bf16.xpose.msra.mxu1 %v647_v42  ;;  %637 = vadd.xlane.f32.xlu1 %v608_v22  ;;  %v742_v42 = vadd.s32 4294967256, %v1325_v31  ;;  %v787_v19 = vsub.s32 %v784_v12, %v1192_v25  ;;  %v798_v22 = vadd.s32 4294967192, %v1325_v31 }
 0x2b6   :  { %939 = vmatprep.subr.bf16.mxu1 %v1072_v0 }
 0x2b7   :  { %639 = vadd.xlane.f32.xlu0 %v609_v23  ;;  %v745_v47 = vsub.s32 %v742_v42, %v1192_v25  ;;  %v794_v23 = vsub.s32 %v791_v18, %v1192_v25 }
 0x2b9   :  { %641 = vadd.xlane.f32.xlu1 %v610_v26 }
 0x2bb   :  { %593 = vadd.xlane.f32.xlu0 %v592_v13 }
 0x2bd   :  { %940 = vmatpush3.bf16.xpose.msra.mxu1 %v648_v3 }
 0x2be   :  { %941 = vmatprep.subr.bf16.mxu1 %v1072_v0 }
 0x2c5   :  { %942 = vmatpush3.bf16.xpose.msra.mxu1 %v649_v62  ;;  %v759_v62 = vsub.s32 %v756_v53, %v1192_v25 }
 0x2c6   :  { %943 = vmatprep.subr.bf16.mxu1 %v1072_v0 }
 0x2cd   :  { %944 = vmatpush3.bf16.xpose.msra.mxu1 %v650_v21 }
 0x2ce   :  { %945 = vmatprep.subr.bf16.mxu1 %v1072_v0  ;;  %v712_v0 = vsub.s32 %v1325_v31, %v1192_v25 }
 0x2d5   :  { %946 = vmatpush3.bf16.xpose.msra.mxu1 %v651_v20 }
 0x2dc   :  { %948 = vmatmul.mubr.bf16.vlgmr.msra.gmra.mrb[0].mxu1 %v643_v28  ;;  %v805_v28 = vadd.s32 4294967184, %v1325_v31 }
 0x327   :  { %v616_v29 = vpop.xlane.xlu0 %615 }
 0x328   :  { %v725_v48 = vrot.slane %v616_v29, %v724_v24  ;;  %v801_v29 = vsub.s32 %v798_v22, %v1192_v25 }
 0x329   :  { %v618_v59 = vpop.xlane.xlu1 %617 }
 0x32a   :  { %v732_v52 = vrot.slane %v618_v59, %v731_v45 }
 0x32b   :  { %v612_v32 = vpop.xlane.xlu0 %611 }
 0x32c   :  { %v713_v40 = vrot.slane %v612_v32, %v712_v0 }
 0x32d   :  { %v614_v4 = vpop.xlane.xlu1 %613 }
 0x32e   :  { %v718_v38 = vrot.slane %v614_v4, %v717_v34  ;;  %v812_v4 = vadd.s32 4294967176, %v1325_v31  ;;  %v808_v34 = vsub.s32 %v805_v28, %v1192_v25 }
 0x32f   :  { %v624_v36 = vpop.xlane.xlu0 %623 }
 0x330   :  { %v720_v46 = vsel %vm719_vm10, %v718_v38, %v713_v40  ;;  %v753_v1 = vrot.slane %v624_v36, %v752_v55 }
 0x331   :  { %v626_v30 = vpop.xlane.xlu1 %625  ;;  %v727_v51 = vsel %vm726_vm12, %v725_v48, %v720_v46 }
 0x332   :  { %v734_v57 = vsel %vm733_vm13, %v732_v52, %v727_v51  ;;  %v760_v7 = vrot.slane %v626_v30, %v759_v62  ;;  %v815_v30 = vsub.s32 %v812_v4, %v1192_v25 }
 0x333   :  { %v620_v41 = vpop.xlane.xlu0 %619 }
 0x334   :  { %v739_v49 = vrot.slane %v620_v41, %v738_v43 }
 0x335   :  { %v622_v50 = vpop.xlane.xlu1 %621 }
 0x336   :  { %v746_v58 = vrot.slane %v622_v50, %v745_v47  ;;  %v741_v60 = vsel %vm740_vm14, %v739_v49, %v734_v57 }
 0x337   :  { %v632_v54 = vpop.xlane.xlu0 %631 }
 0x338   :  { %v748_v3 = vsel %vm747_vm15, %v746_v58, %v741_v60  ;;  %v781_v20 = vrot.slane %v632_v54, %v780_v14 }
 0x339   :  { %v634_v61 = vpop.xlane.xlu1 %633  ;;  %v755_v9 = vsel %vm754_vm0, %v753_v1, %v748_v3 }
 0x33a   :  { %v762_v15 = vsel %vm761_vm1, %v760_v7, %v755_v9  ;;  %v788_v26 = vrot.slane %v634_v61, %v787_v19 }
 0x33b   :  { %v628_v5 = vpop.xlane.xlu0 %627 }
 0x33c   :  { %v767_v10 = vrot.slane %v628_v5, %v766_v2 }
 0x33d   :  { %v630_v11 = vpop.xlane.xlu1 %629 }
 0x33e   :  { %v774_v16 = vrot.slane %v630_v11, %v773_v8  ;;  %v769_v17 = vsel %vm768_vm2, %v767_v10, %v762_v15 }
 0x340   :  { %v776_v21 = vsel %vm775_vm3, %v774_v16, %v769_v17  ;;  %v636_v27 = vpop.xlane.xlu0 %635 }
 0x341   :  { %v783_v13 = vsel %vm782_vm4, %v781_v20, %v776_v21  ;;  %v795_v59 = vrot.slane %v636_v27, %v794_v23 }
 0x342   :  { %v638_v32 = vpop.xlane.xlu1 %637  ;;  %v790_v33 = vsel %vm789_vm5, %v788_v26, %v783_v13 }
 0x343   :  { %v802_v36 = vrot.slane %v638_v32, %v801_v29  ;;  %v797_v0 = vsel %vm796_vm6, %v795_v59, %v790_v33 }
 0x344   :  { %v640_v37 = vpop.xlane.xlu0 %639 }
 0x345   :  { %v809_v35 = vrot.slane %v640_v37, %v808_v34  ;;  %v804_v38 = vsel %vm803_vm7, %v802_v36, %v797_v0 }
 0x346   :  { %v642_v39 = vpop.xlane.xlu1 %641 }
 0x347   :  { %v816_v24 = vrot.slane %v642_v39, %v815_v30  ;;  %v811_v40 = vsel %vm810_vm8, %v809_v35, %v804_v38 }
 0x348   :  { %v594_v41 = vpop.xlane.xlu0 %593 }
 0x349   :  { %v818_v42 = vsel %vm817_vm9, %v816_v24, %v811_v40 }
 0x34a   :  { %v826_v45 = vadd.f32 %v818_v42, %v594_v41 }
 0x3af   :  { %v686_v43 = vpop.f32.mrb[0].mxu1 }
 0x3b0   :  { %v827_v31 = vmul.f32 2.0, %v686_v43  ;;  %v949_v46 = vpop.f32.mrb[1].mxu1 }
 0x3b1   :  { %v689_v48 = vpop.f32.mrb[2].mxu1 }
 0x3b2   :  { %v828_v44 = vsub.f32 %v826_v45, %v827_v31  ;;  %v950_v50 = vpop.f32.mrb[3].mxu1 }
 0x3b4   :  { %v829_v47 = vmax.f32 %v828_v44, 0.0 }
 0x3b6   :  { %995 = vrsqrt.f32 %v829_v47  ;;  %vm832_vm11 = vcmp.eq.f32.partialorder %v829_v47, inf  ;;  %v835_v49 = vand.u32 2147483648, %v829_v47  ;;  %vm834_vm10 = vcmp.eq.f32.partialorder %v829_v47, 0.0 }
 0x3c0   :  { %v996_v51 = vpop.eup %995 }
 0x3c1   :  { %v831_v25 = vmul.f32 %v996_v51, %v829_v47 }
 0x3c3   :  { %v833_v52 = vsel %vm832_vm11, %v829_v47, %v831_v25 }
 0x3c4   :  { %v836_v53 = vsel %vm834_vm10, %v835_v49, %v833_v52 }
 0x3c5   :  { %v837_v54 = vsub.f32 0.0, %v836_v53 }
 0x3c7   :  { %838 = vst [vmem:[%s1367_s5] sm:$0xff] %v837_v54 }
 0x3c8   :  { %843 = vsyncpa [#allocation3], 1 }
 0x3c9   :  { %844 = vsyncpa [#allocation5], 1 }

</bundles_post_ra>
